<compile_context>
chip_gen: v7x
topology: tpu7x:2x2x1
jax: 0.10.0
libtpu: 0.0.40
codegen_flags: <defaults>
</compile_context>

<pallas_src>
import functools

import jax
import jax.numpy as jnp
from jax.experimental import pallas as pl
from jax.experimental.pallas import tpu as pltpu


def _identity_basis_kernel(x_ref, back_ref, fore_ref, *, backcast_size, forecast_size):
    # x_ref: (TILE_B, T) tile resident in VMEM.  Two straight row-wise copies;
    # rows never mix, so garbage rows in a clipped edge block never leak into
    # valid output rows (edge-block writes are masked by Pallas).
    t = x_ref.shape[1]
    # Backcast: first `backcast_size` columns (lane offset 0, aligned).
    back_ref[...] = x_ref[:, :backcast_size]
    # Forecast: last `forecast_size` columns (start lane generally unaligned;
    # the realign runs on the otherwise-idle XLU).
    fore_ref[...] = x_ref[:, t - forecast_size:]


def identity_basis(mb_feats: jax.Array, backcast_size: int, forecast_size: int, *, tile_b=None):
    """Pallas implementation of IdentityBasis.forward.

    mb_feats: (B, T) array with T >= max(backcast_size, forecast_size).
    Returns (backcast, forecast) = (B, backcast_size), (B, forecast_size).
    """
    b, t = mb_feats.shape
    assert 0 < backcast_size <= t and 0 < forecast_size <= t

    itemsize = jnp.dtype(mb_feats.dtype).itemsize
    # Dtype-aware sublane multiple: packed dtypes need taller tiles to avoid
    # sublane relayout (8 rows for 4-byte, 16 for 2-byte, 32 for 1-byte).
    sub = {4: 8, 2: 16, 1: 32}.get(itemsize, 8)

    row_in_bytes = t * itemsize
    row_out_bytes = (backcast_size + forecast_size) * itemsize

    if tile_b is None:
        # Byte-targeted tiling: ~4 MiB of input per tile.  With outputs the
        # double-buffered working set stays well under scoped-VMEM limits on
        # every generation.
        budget = 4 * 1024 * 1024
        tile_b = budget // max(row_in_bytes, 1)
        # v7x: prefer >= ~8 grid steps (>= 4 per TensorCore) when the batch is
        # big enough that each tile still carries >= ~512 KiB of input.
        min_rows_for_overhead = (512 * 1024) // max(row_in_bytes, 1)
        rows_for_eight_tiles = pl.cdiv(b, 8)
        if tile_b > rows_for_eight_tiles >= min_rows_for_overhead:
            tile_b = rows_for_eight_tiles

    # Sublane alignment and clamp to the (sublane-rounded-up) batch.
    tile_b = max(sub, (int(tile_b) // sub) * sub)
    tile_b = min(tile_b, max(sub, pl.cdiv(b, sub) * sub))

    n_tiles = pl.cdiv(b, tile_b)  # non-dividing grid: edge block is clipped on write

    # VMEM: double-buffered input + output tiles, with headroom, bounded by a
    # per-generation-correct fraction of physical VMEM.
    working_set = tile_b * (row_in_bytes + row_out_bytes)
    try:
        vmem_cap = int(pltpu.get_tpu_info().vmem_capacity_bytes)
    except Exception:
        vmem_cap = 64 * 1024 * 1024  # conservative (v7x per-TC physical VMEM)
    vmem_limit_bytes = int(min(vmem_cap // 2, max(32 * 1024 * 1024, 2 * working_set + (4 << 20))))

    kernel = functools.partial(
        _identity_basis_kernel,
        backcast_size=backcast_size,
        forecast_size=forecast_size,
    )

    out_shapes = (
        jax.ShapeDtypeStruct((b, backcast_size), mb_feats.dtype),
        jax.ShapeDtypeStruct((b, forecast_size), mb_feats.dtype),
    )

    back, fore = pl.pallas_call(
        kernel,
        out_shape=out_shapes,
        grid=(n_tiles,),
        in_specs=[pl.BlockSpec((tile_b, t), lambda i: (i, 0))],
        out_specs=(
            pl.BlockSpec((tile_b, backcast_size), lambda i: (i, 0)),
            pl.BlockSpec((tile_b, forecast_size), lambda i: (i, 0)),
        ),
        compiler_params=pltpu.CompilerParams(
            # Batch tiles are fully independent: let Mosaic shard grid steps
            # across both TensorCores on v7x (harmless on v5e/v6e).
            dimension_semantics=("parallel",),
            vmem_limit_bytes=vmem_limit_bytes,
        ),
    )(mb_feats)

    return back, fore


if __name__ == "__main__":
    key = jax.random.PRNGKey(0)

    # Typical N-BEATS theta layout: theta width = backcast + forecast.
    backcast_size = 16
    forecast_size = 8
    theta_width = backcast_size + forecast_size

    # Case 1: multi-step pipelined grid (explicit small tile so grid=(4,)).
    batch = 64
    mb_feats = jax.random.normal(key, (batch, theta_width), dtype=jnp.float32)
    backcast, forecast = identity_basis(mb_feats, backcast_size, forecast_size, tile_b=16)
    backcast = jax.block_until_ready(backcast)
    forecast = jax.block_until_ready(forecast)
    assert backcast.shape == (batch, backcast_size)
    assert forecast.shape == (batch, forecast_size)
    assert jnp.array_equal(backcast, mb_feats[:, :backcast_size])
    assert jnp.array_equal(forecast, mb_feats[:, -forecast_size:])

    # Case 2: batch not a multiple of 8 (exercises the edge-block clipping
    # path, no jnp.pad anymore) and overlapping slices
    # (backcast + forecast > theta width), which the PyTorch module permits.
    batch2, t2 = 10, 24
    back2_size, fore2_size = 16, 16
    mb2 = jax.random.normal(jax.random.PRNGKey(0), (batch2, t2), dtype=jnp.float32)
    back2, fore2 = identity_basis(mb2, back2_size, fore2_size)
    back2 = jax.block_until_ready(back2)
    fore2 = jax.block_until_ready(fore2)
    assert back2.shape == (batch2, back2_size)
    assert fore2.shape == (batch2, fore2_size)
    assert jnp.array_equal(back2, mb2[:, :back2_size])
    assert jnp.array_equal(fore2, mb2[:, -fore2_size:])

    # Case 3: bf16 inputs (exercises the dtype-aware sublane rounding) with a
    # batch that is neither a multiple of 8 nor 16.
    batch3 = 20
    mb3 = jax.random.normal(jax.random.PRNGKey(0), (batch3, theta_width)).astype(jnp.bfloat16)
    back3, fore3 = identity_basis(mb3, backcast_size, forecast_size)
    back3 = jax.block_until_ready(back3)
    fore3 = jax.block_until_ready(fore3)
    assert back3.dtype == jnp.bfloat16 and fore3.dtype == jnp.bfloat16
    assert jnp.array_equal(back3, mb3[:, :backcast_size])
    assert jnp.array_equal(fore3, mb3[:, -forecast_size:])

    print("KERNEL_OK")
</pallas_src>

<mosaic_0001>
module attributes {stable_mosaic.version = 11 : i64} {
  func.func @_identity_basis_kernel(%arg0: i32, %arg1: memref<16x24xf32, #tpu.memory_space<vmem>>, %arg2: memref<16x16xf32, #tpu.memory_space<vmem>>, %arg3: memref<16x8xf32, #tpu.memory_space<vmem>>) attributes {dimension_semantics = [#tpu.dimension_semantics<parallel>], iteration_bounds = array<i64: 4>, scalar_prefetch = 0 : i64, scratch_operands = 0 : i64, tpu.core_type = #tpu.core_type<tc>, window_params = [{transform_indices = @transform_0, window_bounds = array<i64: 16, 24>}, {transform_indices = @transform_1, window_bounds = array<i64: 16, 16>}, {transform_indices = @transform_2, window_bounds = array<i64: 16, 8>}]} {
    %c0 = arith.constant 0 : index
    %c0_0 = arith.constant 0 : index
    %0 = vector.load %arg1[%c0, %c0_0] : memref<16x24xf32, #tpu.memory_space<vmem>>, vector<16x16xf32>
    %c0_1 = arith.constant 0 : index
    %c0_2 = arith.constant 0 : index
    %1 = vector.load %arg2[%c0_1, %c0_2] : memref<16x16xf32, #tpu.memory_space<vmem>>, vector<16x16xf32>
    tpu.vector_store %arg2[%c0_1, %c0_2], %0 {strides = array<i32>} : memref<16x16xf32, #tpu.memory_space<vmem>>, vector<16x16xf32>,
    %c0_3 = arith.constant 0 : index
    %c16 = arith.constant 16 : index
    %2 = vector.load %arg1[%c0_3, %c16] : memref<16x24xf32, #tpu.memory_space<vmem>>, vector<16x8xf32>
    %c0_4 = arith.constant 0 : index
    %c0_5 = arith.constant 0 : index
    %3 = vector.load %arg3[%c0_4, %c0_5] : memref<16x8xf32, #tpu.memory_space<vmem>>, vector<16x8xf32>
    tpu.vector_store %arg3[%c0_4, %c0_5], %2 {strides = array<i32>} : memref<16x8xf32, #tpu.memory_space<vmem>>, vector<16x8xf32>,
    return
  }
  func.func @transform_0(%arg0: i32) -> (i32, i32) {
    %c0_i32 = arith.constant 0 : i32
    %c0_i32_0 = arith.constant 0 : i32
    return %arg0, %c0_i32 : i32, i32
  }
  func.func @transform_1(%arg0: i32) -> (i32, i32) {
    %c0_i32 = arith.constant 0 : i32
    %c0_i32_0 = arith.constant 0 : i32
    return %arg0, %c0_i32 : i32, i32
  }
  func.func @transform_2(%arg0: i32) -> (i32, i32) {
    %c0_i32 = arith.constant 0 : i32
    %c0_i32_0 = arith.constant 0 : i32
    return %arg0, %c0_i32 : i32, i32
  }
}

</mosaic_0001>

<bundles_post_ra>
// kernel: tpu_custom_call.1
= control target key start
LH: loop header
LB: loop body
LE: loop exit
PB: predicated region body
PF: predicated region fallthrough
CT: control target
= control target key end

     0   :  { %s315_s9 = smov 0   ;;  %s335_s0 = inlined_call_operand.vmem [shape: f32[64,24], index: 0, kind: input, shape index: {}]   ;;  %s336_s1 = inlined_call_operand.vmem [shape: f32[64,16], index: 1, kind: output, shape index: {0}]   ;;  %s337_s2 = inlined_call_operand.vmem [shape: f32[64,8], index: 2, kind: output, shape index: {1}]  }
   0x1 LB: > { %s269_s10 = sadd.s32 4294967295, %s297_s9   ;;  %p273_p0 = scmp.ge.s32.totalorder %s297_s9, 1  ;;  %s297_s9 = sphi %s315_s9, %s13_s9  }
   0x2   : > { %p116_p1 = scmp.lt.s32.totalorder %s297_s9, 5 }
   0x4   : > { %p117_p2 = pnand %p273_p0, %p116_p1 }
   0x5   : > { %s274_s11 = sshll.u32 (!%p117_p2), %s269_s10, 1  ;;  %vm163_vm0 = vcmask (!%p117_p2), 130048   ;;  %s299_s19 = smov (!%p117_p2), 112   ;;  %vm176_vm1 = vcmask (!%p117_p2), 64512  }
   0x6   : > { %120 = sbr.rel (%p117_p2) target bundleno = 137 (0x89), region = 24  ;;  %p144_p3 = scmp.lt.s32.totalorder (!%p117_p2), %s274_s11, 7 }
   0xd   : > { %s339_s11 = smov (!%p144_p3, %s274_s11), 7 }
   0xe   : > { %s275_s12 = sshll.u32 %s339_s11, 3 }
   0xf   : > { %s147_s15 = scalar_lea.vmem %s335_s0, %s275_s12  ;;  %s153_s18 = scalar_lea.vmem %s336_s1, %s275_s12 }
  0x10   : > { %v166_v0 = vld [vmem:[%s147_s15] sm:$0xff]  ;;  %v162_v1 = vld [vmem:[%s147_s15 + $0x8] sm:$0xff]  ;;  %s159_s22 = scalar_lea.vmem %s337_s2, %s275_s12 }
  0x11   : > { %170 = vrot.lane.b32.xlu0 %v166_v0, %s299_s19  ;;  %164 = vst.msk [vmem:[%s153_s18] sm:$0xff] %vm163_vm0, %v166_v0  ;;  %165 = vst.msk [vmem:[%s153_s18 + $0x8] sm:$0xff] %vm163_vm0, %v162_v1 }
  0x15   : > { %172 = vrot.lane.b32.xlu0 %v162_v1, %s299_s19 }
  0x83   : > { %v171_v2 = vpop.permute.xlu0 %170 }
  0x84   : > { %177 = vst.msk [vmem:[%s159_s22] sm:$0xff] %vm176_vm1, %v171_v2 }
  0x87   : > { %v173_v3 = vpop.permute.xlu0 %172 }
  0x88   : > { %178 = vst.msk [vmem:[%s159_s22 + $0x8] sm:$0xff] %vm176_vm1, %v173_v3 }
  0x89 PF: > { %s13_s9 = sadd.s32 1, %s297_s9  }
  0x8a   : > { %p10_p4 = scmp.ge.s32.totalorder %s13_s9, 6  }
  0x8c   :  { %12 = sbr.rel (!%p10_p4) target bundleno = 1 (0x1), region = 66 }

</bundles_post_ra>
